<compile_context>
chip_gen: v6e
topology: v6e:2x2x1
jax: 0.10.0
libtpu: 0.0.40
codegen_flags: <defaults>
</compile_context>

<pallas_src>
import jax
import jax.numpy as jnp
from jax.experimental import pallas as pl
from jax.experimental.pallas import tpu as pltpu


LANES = 1024                 # lane-dense slab width: multiple of 128 -> unmasked vst
TILE_ROWS = 1024             # 1024 x 1024 f32 = 4 MiB per tile
PALLAS_MIN_ELEMS = 64 * 1024  # below this, a fused XLA w*x+b beats any Pallas launch


def linear_kernel(w_ref, b_ref, x_ref, o_ref):
    # w, b are f32 scalars living in SMEM (32-bit scalar memory).  Compute in
    # f32 on the VPU and cast on store so the kernel stays correct for any
    # input dtype on every generation (v5e has no bf16 VPU).
    w = w_ref[0, 0]
    b = b_ref[0, 0]
    x = x_ref[...].astype(jnp.float32)
    o_ref[...] = (w * x + b).astype(o_ref.dtype)


def _pallas_wx_plus_b_2d(x2d, w2, b2):
    """y = w*x + b on a (rows, lanes) slab, streamed tile-by-tile from HBM."""
    rows, lanes = x2d.shape
    tile_rows = min(TILE_ROWS, rows)      # block == full dim when rows is small
    grid = (pl.cdiv(rows, tile_rows),)    # ragged last row-block -> masked by Pallas
    nbytes = x2d.dtype.itemsize
    return pl.pallas_call(
        linear_kernel,
        out_shape=jax.ShapeDtypeStruct((rows, lanes), x2d.dtype),
        grid=grid,
        in_specs=[
            pl.BlockSpec((1, 1), lambda i: (0, 0), memory_space=pltpu.SMEM),  # w
            pl.BlockSpec((1, 1), lambda i: (0, 0), memory_space=pltpu.SMEM),  # b
            pl.BlockSpec((tile_rows, lanes), lambda i: (i, 0)),               # x tile
        ],
        out_specs=pl.BlockSpec((tile_rows, lanes), lambda i: (i, 0)),
        compiler_params=pltpu.CompilerParams(
            # Shards the streaming axis across the 2 TensorCores on v7x
            # (measured no-op on single-TC v5e/v6e).
            dimension_semantics=("parallel",),
            # 4 MiB tiles, double-buffered in+out ~= 16 MiB working set; raise
            # the scoped-VMEM limit so this also fits v5e's 16 MiB default.
            vmem_limit_bytes=32 * 1024 * 1024,
        ),
        cost_estimate=pl.CostEstimate(
            flops=2 * rows * lanes,                    # one mul + one add / elem
            bytes_accessed=2 * rows * lanes * nbytes,  # read x + write y
            transcendentals=0,
        ),
    )(w2, b2, x2d)


def linear_forward(x, w_scalar, b_scalar, force_pallas=False):
    """y = w * x + b, matching LinearModel.forward.  x may be any shape."""
    w = jnp.asarray(w_scalar, dtype=jnp.float32)
    b = jnp.asarray(b_scalar, dtype=jnp.float32)
    n = x.size
    if n == 0:
        return x

    if n < PALLAS_MIN_ELEMS and not force_pallas:
        # Tiny inputs (e.g. the module's 5-element demo): a fused XLA op is
        # strictly cheaper than any kernel launch.
        return (w * x.astype(jnp.float32) + b).astype(x.dtype)

    w2 = w.reshape(1, 1)
    b2 = b.reshape(1, 1)
    x_flat = x.reshape(-1)

    if n < LANES:
        # Too small for a lane-dense slab: one (1, n) block (== full array
        # dims, so a legal BlockSpec).  No padding, no copies.
        y2d = _pallas_wx_plus_b_2d(x_flat.reshape(1, n), w2, b2)
        return y2d.reshape(x.shape)

    rows = n // LANES
    n_main = rows * LANES

    if n_main == n:
        # Lane-aligned size: 1-D <-> 2-D reshapes are free bitcasts, so the
        # kernel's 2 HBM passes are the only data movement (no pad, no slice).
        y2d = _pallas_wx_plus_b_2d(x_flat.reshape(rows, LANES), w2, b2)
        return y2d.reshape(x.shape)

    # Ragged size: Pallas streams the lane-aligned prefix; the < 1024-element
    # tail is plain XLA.  (Prefix slice + concat cost one bounded extra pass,
    # vs. two full pad/slice passes in the previous version.)
    y_main = _pallas_wx_plus_b_2d(
        x_flat[:n_main].reshape(rows, LANES), w2, b2).reshape(-1)
    y_tail = (w * x_flat[n_main:].astype(jnp.float32) + b).astype(x.dtype)
    return jnp.concatenate([y_main, y_tail]).reshape(x.shape)


if __name__ == "__main__":
    # Deterministic parameters, exactly as in LinearModel.__init__:
    w = jnp.float32(1.0)
    b = jnp.float32(1.0)

    # The module's example input: torch.tensor([5., 7., 12., 16., 20.]).view(-1, 1)
    x_fixed = jnp.array([5.0, 7.0, 12.0, 16.0, 20.0], dtype=jnp.float32).reshape(-1, 1)

    # Deterministic larger inputs that exercise the streaming paths.
    key = jax.random.PRNGKey(0)
    k1, k2 = jax.random.split(key)
    # (a) lane-aligned: n % 1024 == 0 -> zero-copy wrapper; rows = 1536 gives a
    #     2-step (even) grid with a ragged last row-block handled by masking.
    x_aligned = jax.random.normal(k1, (1536 * LANES, 1), dtype=jnp.float32)
    # (b) ragged: lane-aligned prefix through Pallas + 700-element XLA tail.
    x_ragged = jax.random.normal(k2, (520 * LANES + 700, 1), dtype=jnp.float32)

    # Small input -> fused XLA dispatch ...
    y_fixed = jax.block_until_ready(linear_forward(x_fixed, w, b))
    # ... and once through the Pallas kernel (single-block path) to verify it.
    y_fixed_pallas = jax.block_until_ready(
        linear_forward(x_fixed, w, b, force_pallas=True))
    # Larger inputs -> tiled Pallas streaming paths.
    y_aligned = jax.block_until_ready(linear_forward(x_aligned, w, b))
    y_ragged = jax.block_until_ready(linear_forward(x_ragged, w, b))

    # Reference check (plain JAX).
    assert jnp.allclose(y_fixed, w * x_fixed + b, atol=1e-6)
    assert jnp.allclose(y_fixed_pallas, w * x_fixed + b, atol=1e-6)
    assert jnp.allclose(y_aligned, w * x_aligned + b, atol=1e-6)
    assert jnp.allclose(y_ragged, w * x_ragged + b, atol=1e-6)

    print("KERNEL_OK")
</pallas_src>

<mosaic_0001>
module attributes {stable_mosaic.version = 11 : i64} {
  func.func @linear_kernel(%arg0: i32, %arg1: memref<1x1xf32, #tpu.memory_space<smem>>, %arg2: memref<1x1xf32, #tpu.memory_space<smem>>, %arg3: memref<1x5xf32, #tpu.memory_space<vmem>>, %arg4: memref<1x5xf32, #tpu.memory_space<vmem>>) attributes {dimension_semantics = [#tpu.dimension_semantics<parallel>], iteration_bounds = array<i64: 1>, scalar_prefetch = 0 : i64, scratch_operands = 0 : i64, tpu.core_type = #tpu.core_type<tc>, window_params = [{transform_indices = @transform_0, window_bounds = array<i64: 1, 1>}, {transform_indices = @transform_1, window_bounds = array<i64: 1, 1>}, {transform_indices = @transform_2, window_bounds = array<i64: 1, 5>}, {transform_indices = @transform_3, window_bounds = array<i64: 1, 5>}]} {
    %c0 = arith.constant 0 : index
    %c0_0 = arith.constant 0 : index
    %0 = memref.load %arg1[%c0, %c0_0] : memref<1x1xf32, #tpu.memory_space<smem>>
    %c0_1 = arith.constant 0 : index
    %c0_2 = arith.constant 0 : index
    %1 = memref.load %arg2[%c0_1, %c0_2] : memref<1x1xf32, #tpu.memory_space<smem>>
    %c0_3 = arith.constant 0 : index
    %c0_4 = arith.constant 0 : index
    %2 = vector.load %arg3[%c0_3, %c0_4] : memref<1x5xf32, #tpu.memory_space<vmem>>, vector<1x5xf32>
    %3 = vector.broadcast %0 : f32 to vector<1x5xf32>
    %4 = arith.mulf %3, %2 : vector<1x5xf32>
    %5 = vector.broadcast %1 : f32 to vector<1x5xf32>
    %6 = arith.addf %4, %5 : vector<1x5xf32>
    %c0_5 = arith.constant 0 : index
    %c0_6 = arith.constant 0 : index
    %7 = vector.load %arg4[%c0_5, %c0_6] : memref<1x5xf32, #tpu.memory_space<vmem>>, vector<1x5xf32>
    tpu.vector_store %arg4[%c0_5, %c0_6], %6 {strides = array<i32>} : memref<1x5xf32, #tpu.memory_space<vmem>>, vector<1x5xf32>,
    return
  }
  func.func @transform_0(%arg0: i32) -> (i32, i32) {
    %c0_i32 = arith.constant 0 : i32
    %c0_i32_0 = arith.constant 0 : i32
    %c0_i32_1 = arith.constant 0 : i32
    return %c0_i32, %c0_i32_0 : i32, i32
  }
  func.func @transform_1(%arg0: i32) -> (i32, i32) {
    %c0_i32 = arith.constant 0 : i32
    %c0_i32_0 = arith.constant 0 : i32
    %c0_i32_1 = arith.constant 0 : i32
    return %c0_i32, %c0_i32_0 : i32, i32
  }
  func.func @transform_2(%arg0: i32) -> (i32, i32) {
    %c0_i32 = arith.constant 0 : i32
    %c0_i32_0 = arith.constant 0 : i32
    return %arg0, %c0_i32 : i32, i32
  }
  func.func @transform_3(%arg0: i32) -> (i32, i32) {
    %c0_i32 = arith.constant 0 : i32
    %c0_i32_0 = arith.constant 0 : i32
    return %arg0, %c0_i32 : i32, i32
  }
}

</mosaic_0001>

<bundles_post_ra>
// kernel: tpu_custom_call.1
= control target key start
LH: loop header
LB: loop body
LE: loop exit
PB: predicated region body
PF: predicated region fallthrough
CT: control target
= control target key end

     0   :  { %s96_s0 = inlined_call_operand.<no memory space> [shape: f32[1,1], index: 0, kind: input, shape index: {}]   ;;  %s97_s1 = inlined_call_operand.<no memory space> [shape: f32[1,1], index: 1, kind: input, shape index: {}]   ;;  %s98_s2 = inlined_call_operand.vmem [shape: f32[1,5], index: 2, kind: input, shape index: {}]   ;;  %s99_s3 = inlined_call_operand.hbm [shape: f32[1,5], index: 3, kind: output, shape index: {}]  }
   0x1   :  { %v19_v0 = vld [vmem:[%s98_s2] sm:$0x1]  ;;  %v20_v1 = vstv %s96_s0  ;;  %v22_v2 = vstv %s97_s1 }
   0x2   :  { %10 = vsyncpa [#allocation5], 0  ;;  %v21_v3 = vmul.f32 %v20_v1, %v19_v0  ;;  %s63_s18 = smov [#allocation4]   ;;  %vm24_vm0 = vcmask 32768  }
   0x3   :  { %s32_s19 = sshll.u32 %s63_s18, 4  ;;  %s33_s19 = int_to_ptr.vmem [resolvable:$true] %s32_s19 }
   0x4   :  { %v23_v4 = vadd.f32 %v22_v2, %v21_v3  ;;  %s41_s20 = scalar_lea.vmem %s33_s19, 16  ;;  %s45_s21 = scalar_lea.vmem %s33_s19, 32 }
   0x5   :  { %p42_p0 = scmp.ne.s32.totalorder %s33_s19, %s41_s20  ;;  %p46_p1 = scmp.lt.s32.totalorder %s33_s19, %s33_s19 }
   0x6   :  { %25 = vst.msk [vmem:[#allocation4] sm:$0x1] %vm24_vm0, %v23_v4  ;;  %p47_p2 = scmp.lt.s32.totalorder %s45_s21, %s41_s20 }
   0x8   :  { %p48_p3 = por %p47_p2, %p46_p1 }
   0xa   :  { %p49_p4 = pnand %p48_p3, %p42_p0 }
   0xc   :  { %52 = shalt.err (!%p49_p4)
}
   0xd   :  { %35 = dma.vmem_to_hbm [thread:$0]  %s33_s19, 16, %s99_s3, [#allocation5]  }
   0xe   :  { %61 = dma.done.wait [#allocation5], 16  }
   0xf   :  { %62 = vsyncadd [#allocation5], 4294967280 }
  0x10   :  { %39 = vsyncpa [#allocation5], 1 }

</bundles_post_ra>
